<compile_context>
chip_gen: v6e
topology: v6e:2x2x1
jax: 0.10.0
libtpu: 0.0.40
codegen_flags: <defaults>
</compile_context>

<pallas_src>
import functools

import jax
import jax.numpy as jnp
from jax.experimental import pallas as pl
from jax.experimental.pallas import tpu as pltpu


HIDDEN = 128          # fc1/fc2 width (fixed by the module)
MAX_TILE_B = 1024     # batch-tile cap: amortizes per-step overhead, tiny VMEM cost


def _round_up(n, m):
    return ((n + m - 1) // m) * m


def _dqn_kernel(x_ref, w1_ref, b1_ref, w2_ref, b2_ref, w3_ref, b3_ref, o_ref):
    # x tile arrives as (tb, d_in) f32; cast to bf16 in-kernel for the MXU.
    x = x_ref[...].astype(jnp.bfloat16)
    # fc1 + ReLU: (tb, d_in) @ (d_in, 128) -> f32 acc; bias+ReLU in f32.
    h1 = jnp.dot(x, w1_ref[...], preferred_element_type=jnp.float32)
    h1 = jnp.maximum(h1 + b1_ref[...], 0.0).astype(jnp.bfloat16)
    # fc2 + ReLU: (tb, 128) @ (128, 128)
    h2 = jnp.dot(h1, w2_ref[...], preferred_element_type=jnp.float32)
    h2 = jnp.maximum(h2 + b2_ref[...], 0.0).astype(jnp.bfloat16)
    # fc3 (no activation): (tb, 128) @ (128, action_size), narrow f32 output.
    out = jnp.dot(h2, w3_ref[...], preferred_element_type=jnp.float32)
    o_ref[...] = (out + b3_ref[...]).astype(o_ref.dtype)


def _pick_tile_b(B, max_tile_b):
    """Batch tile: big (overhead amortization) but >=2 grid steps whenever the
    batch allows it, so v7x's 2 TensorCores both get work.  Row tiles only need
    sublane (8) alignment; the edge block is clipped by Pallas."""
    half = _round_up(pl.cdiv(B, 2), 8)
    return max(8, min(max_tile_b, half))


def dqn_negotiator_forward(x, packed_params, *, max_tile_b=MAX_TILE_B):
    """Fused 3-layer MLP forward.

    x: (B, input_size) f32 (unpadded).  packed_params: bf16 weights / f32
    biases from pack_params() (unpadded).  Returns (B, action_size) f32.
    """
    w1, b1, w2, b2, w3, b3 = packed_params
    B, d_in = x.shape
    assert w1.shape == (d_in, HIDDEN)
    action_size = w3.shape[1]

    tb = _pick_tile_b(B, max_tile_b)
    grid = (pl.cdiv(B, tb),)

    flops = 2 * B * (d_in * HIDDEN + HIDDEN * HIDDEN + HIDDEN * action_size)
    bytes_accessed = (
        B * (d_in + action_size) * 4                     # x in + q-values out (f32)
        + (w1.size + w2.size + w3.size) * 2              # bf16 weights
        + (b1.size + b2.size + b3.size) * 4              # f32 biases
    )

    out = pl.pallas_call(
        _dqn_kernel,
        out_shape=jax.ShapeDtypeStruct((B, action_size), jnp.float32),
        grid=grid,
        in_specs=[
            pl.BlockSpec((tb, d_in), lambda i: (i, 0)),             # x: batch-tiled, f32
            pl.BlockSpec((d_in, HIDDEN), lambda i: (0, 0)),         # w1 (VMEM resident)
            pl.BlockSpec((1, HIDDEN), lambda i: (0, 0)),            # b1
            pl.BlockSpec((HIDDEN, HIDDEN), lambda i: (0, 0)),       # w2
            pl.BlockSpec((1, HIDDEN), lambda i: (0, 0)),            # b2
            pl.BlockSpec((HIDDEN, action_size), lambda i: (0, 0)),  # w3 (unpadded)
            pl.BlockSpec((1, action_size), lambda i: (0, 0)),       # b3 (unpadded)
        ],
        out_specs=pl.BlockSpec((tb, action_size), lambda i: (i, 0)),
        compiler_params=pltpu.CompilerParams(
            dimension_semantics=("parallel",),   # v7x: shard batch tiles over 2 TCs
        ),
        cost_estimate=pl.CostEstimate(
            flops=flops, transcendentals=0, bytes_accessed=bytes_accessed),
    )(x, w1, b1, w2, b2, w3, b3)

    return out


def init_params(key, input_size, action_size):
    """nn.Linear-style init (uniform +-1/sqrt(fan_in)); weights stored
    transposed as (in_features, out_features), f32, unpadded."""
    ks = jax.random.split(key, 6)

    def linear(kw, kb, fan_in, fan_out):
        bound = 1.0 / jnp.sqrt(jnp.float32(fan_in))
        w = jax.random.uniform(kw, (fan_in, fan_out), jnp.float32, -bound, bound)
        b = jax.random.uniform(kb, (1, fan_out), jnp.float32, -bound, bound)
        return w, b

    w1, b1 = linear(ks[0], ks[1], input_size, HIDDEN)
    w2, b2 = linear(ks[2], ks[3], HIDDEN, HIDDEN)
    w3, b3 = linear(ks[4], ks[5], HIDDEN, action_size)
    return (w1, b1, w2, b2, w3, b3)


def pack_params(params_f32):
    """Cast weights to bf16 for the MXU; biases stay f32 (bias-add/ReLU run on
    the f32 VPU path, friendly to v5e).  No padding anywhere."""
    w1, b1, w2, b2, w3, b3 = params_f32
    return (
        w1.astype(jnp.bfloat16), b1.astype(jnp.float32),
        w2.astype(jnp.bfloat16), b2.astype(jnp.float32),
        w3.astype(jnp.bfloat16), b3.astype(jnp.float32),
    )


def reference_forward(x, params_f32):
    """Pure-JAX reference mimicking the kernel's bf16-weight / f32-accum math."""
    w1, b1, w2, b2, w3, b3 = params_f32
    bf = lambda a: a.astype(jnp.bfloat16).astype(jnp.float32)
    h1 = jnp.maximum(bf(x) @ bf(w1) + b1, 0.0)
    h2 = jnp.maximum(bf(h1) @ bf(w2) + b2, 0.0)
    return bf(h2) @ bf(w3) + b3


if __name__ == "__main__":
    key = jax.random.PRNGKey(0)
    k_params, k_x_big, k_x_small = jax.random.split(key, 3)

    input_size = 16    # negotiation state feature vector
    action_size = 8    # discrete negotiation actions

    params = init_params(k_params, input_size, action_size)
    packed = pack_params(params)

    fwd = functools.partial(dqn_negotiator_forward)

    # 1) Larger batch: exercises the 2-step grid (tb = B/2) / pipelined path.
    xb = jax.random.normal(k_x_big, (384, input_size), jnp.float32)
    out_b = jax.block_until_ready(fwd(xb, packed))
    ref_b = reference_forward(xb, params)
    assert out_b.shape == (384, action_size)
    assert jnp.allclose(out_b, ref_b, atol=2e-2, rtol=2e-2), "mismatch (large batch)"

    # 2) Small ragged batch: exercises the clipped edge block (no jnp.pad).
    xs = jax.random.normal(k_x_small, (5, input_size), jnp.float32)
    out_s = jax.block_until_ready(fwd(xs, packed))
    ref_s = reference_forward(xs, params)
    assert out_s.shape == (5, action_size)
    assert jnp.allclose(out_s, ref_s, atol=2e-2, rtol=2e-2), "mismatch (small batch)"

    print("KERNEL_OK")
</pallas_src>

<mosaic_0001>
module attributes {stable_mosaic.version = 11 : i64} {
  func.func @_dqn_kernel(%arg0: i32, %arg1: memref<192x16xf32, #tpu.memory_space<vmem>>, %arg2: memref<16x128xbf16, #tpu.memory_space<vmem>>, %arg3: memref<1x128xf32, #tpu.memory_space<vmem>>, %arg4: memref<128x128xbf16, #tpu.memory_space<vmem>>, %arg5: memref<1x128xf32, #tpu.memory_space<vmem>>, %arg6: memref<128x8xbf16, #tpu.memory_space<vmem>>, %arg7: memref<1x8xf32, #tpu.memory_space<vmem>>, %arg8: memref<192x8xf32, #tpu.memory_space<vmem>>) attributes {dimension_semantics = [#tpu.dimension_semantics<parallel>], iteration_bounds = array<i64: 2>, scalar_prefetch = 0 : i64, scratch_operands = 0 : i64, tpu.core_type = #tpu.core_type<tc>, window_params = [{transform_indices = @transform_0, window_bounds = array<i64: 192, 16>}, {pipeline_mode = #tpu.pipeline_mode<synchronous>, transform_indices = @transform_1, window_bounds = array<i64: 16, 128>}, {pipeline_mode = #tpu.pipeline_mode<synchronous>, transform_indices = @transform_2, window_bounds = array<i64: 1, 128>}, {pipeline_mode = #tpu.pipeline_mode<synchronous>, transform_indices = @transform_3, window_bounds = array<i64: 128, 128>}, {pipeline_mode = #tpu.pipeline_mode<synchronous>, transform_indices = @transform_4, window_bounds = array<i64: 1, 128>}, {pipeline_mode = #tpu.pipeline_mode<synchronous>, transform_indices = @transform_5, window_bounds = array<i64: 128, 8>}, {pipeline_mode = #tpu.pipeline_mode<synchronous>, transform_indices = @transform_6, window_bounds = array<i64: 1, 8>}, {transform_indices = @transform_7, window_bounds = array<i64: 192, 8>}]} {
    %c0 = arith.constant 0 : index
    %c0_0 = arith.constant 0 : index
    %0 = vector.load %arg1[%c0, %c0_0] : memref<192x16xf32, #tpu.memory_space<vmem>>, vector<192x16xf32>
    %1 = arith.truncf %0 : vector<192x16xf32> to vector<192x16xbf16>
    %c0_1 = arith.constant 0 : index
    %c0_2 = arith.constant 0 : index
    %2 = vector.load %arg2[%c0_1, %c0_2] : memref<16x128xbf16, #tpu.memory_space<vmem>>, vector<16x128xbf16>
    %cst = arith.constant dense<0.000000e+00> : vector<192x128xf32>
    %3 = tpu.matmul %1, %2, %cst {dimension_numbers = #tpu.dot_dimension_numbers<[1], [0], [0], [1], [0, 0, 1, 1], [], []>} : vector<192x16xbf16>, vector<16x128xbf16>, vector<192x128xf32> -> vector<192x128xf32>
    %c0_3 = arith.constant 0 : index
    %c0_4 = arith.constant 0 : index
    %4 = vector.load %arg3[%c0_3, %c0_4] : memref<1x128xf32, #tpu.memory_space<vmem>>, vector<1x128xf32>
    %5 = vector.broadcast %4 : vector<1x128xf32> to vector<192x128xf32>
    %6 = arith.addf %3, %5 : vector<192x128xf32>
    %cst_5 = arith.constant 0.000000e+00 : f32
    %7 = vector.broadcast %cst_5 : f32 to vector<192x128xf32>
    %8 = arith.maximumf %6, %7 : vector<192x128xf32>
    %9 = arith.truncf %8 : vector<192x128xf32> to vector<192x128xbf16>
    %c0_6 = arith.constant 0 : index
    %c0_7 = arith.constant 0 : index
    %10 = vector.load %arg4[%c0_6, %c0_7] : memref<128x128xbf16, #tpu.memory_space<vmem>>, vector<128x128xbf16>
    %cst_8 = arith.constant dense<0.000000e+00> : vector<192x128xf32>
    %11 = tpu.matmul %9, %10, %cst_8 {dimension_numbers = #tpu.dot_dimension_numbers<[1], [0], [0], [1], [0, 0, 1, 1], [], []>} : vector<192x128xbf16>, vector<128x128xbf16>, vector<192x128xf32> -> vector<192x128xf32>
    %c0_9 = arith.constant 0 : index
    %c0_10 = arith.constant 0 : index
    %12 = vector.load %arg5[%c0_9, %c0_10] : memref<1x128xf32, #tpu.memory_space<vmem>>, vector<1x128xf32>
    %13 = vector.broadcast %12 : vector<1x128xf32> to vector<192x128xf32>
    %14 = arith.addf %11, %13 : vector<192x128xf32>
    %cst_11 = arith.constant 0.000000e+00 : f32
    %15 = vector.broadcast %cst_11 : f32 to vector<192x128xf32>
    %16 = arith.maximumf %14, %15 : vector<192x128xf32>
    %17 = arith.truncf %16 : vector<192x128xf32> to vector<192x128xbf16>
    %c0_12 = arith.constant 0 : index
    %c0_13 = arith.constant 0 : index
    %18 = vector.load %arg6[%c0_12, %c0_13] : memref<128x8xbf16, #tpu.memory_space<vmem>>, vector<128x8xbf16>
    %cst_14 = arith.constant dense<0.000000e+00> : vector<192x8xf32>
    %19 = tpu.matmul %17, %18, %cst_14 {dimension_numbers = #tpu.dot_dimension_numbers<[1], [0], [0], [1], [0, 0, 1, 1], [], []>} : vector<192x128xbf16>, vector<128x8xbf16>, vector<192x8xf32> -> vector<192x8xf32>
    %c0_15 = arith.constant 0 : index
    %c0_16 = arith.constant 0 : index
    %20 = vector.load %arg7[%c0_15, %c0_16] : memref<1x8xf32, #tpu.memory_space<vmem>>, vector<1x8xf32>
    %21 = vector.broadcast %20 : vector<1x8xf32> to vector<192x8xf32>
    %22 = arith.addf %19, %21 : vector<192x8xf32>
    %c0_17 = arith.constant 0 : index
    %c0_18 = arith.constant 0 : index
    %23 = vector.load %arg8[%c0_17, %c0_18] : memref<192x8xf32, #tpu.memory_space<vmem>>, vector<192x8xf32>
    tpu.vector_store %arg8[%c0_17, %c0_18], %22 {strides = array<i32>} : memref<192x8xf32, #tpu.memory_space<vmem>>, vector<192x8xf32>,
    return
  }
  func.func @transform_0(%arg0: i32) -> (i32, i32) {
    %c0_i32 = arith.constant 0 : i32
    %c0_i32_0 = arith.constant 0 : i32
    return %arg0, %c0_i32 : i32, i32
  }
  func.func @transform_1(%arg0: i32) -> (i32, i32) {
    %c0_i32 = arith.constant 0 : i32
    %c0_i32_0 = arith.constant 0 : i32
    %c0_i32_1 = arith.constant 0 : i32
    return %c0_i32, %c0_i32_0 : i32, i32
  }
  func.func @transform_2(%arg0: i32) -> (i32, i32) {
    %c0_i32 = arith.constant 0 : i32
    %c0_i32_0 = arith.constant 0 : i32
    %c0_i32_1 = arith.constant 0 : i32
    return %c0_i32, %c0_i32_0 : i32, i32
  }
  func.func @transform_3(%arg0: i32) -> (i32, i32) {
    %c0_i32 = arith.constant 0 : i32
    %c0_i32_0 = arith.constant 0 : i32
    %c0_i32_1 = arith.constant 0 : i32
    return %c0_i32, %c0_i32_0 : i32, i32
  }
  func.func @transform_4(%arg0: i32) -> (i32, i32) {
    %c0_i32 = arith.constant 0 : i32
    %c0_i32_0 = arith.constant 0 : i32
    %c0_i32_1 = arith.constant 0 : i32
    return %c0_i32, %c0_i32_0 : i32, i32
  }
  func.func @transform_5(%arg0: i32) -> (i32, i32) {
    %c0_i32 = arith.constant 0 : i32
    %c0_i32_0 = arith.constant 0 : i32
    %c0_i32_1 = arith.constant 0 : i32
    return %c0_i32, %c0_i32_0 : i32, i32
  }
  func.func @transform_6(%arg0: i32) -> (i32, i32) {
    %c0_i32 = arith.constant 0 : i32
    %c0_i32_0 = arith.constant 0 : i32
    %c0_i32_1 = arith.constant 0 : i32
    return %c0_i32, %c0_i32_0 : i32, i32
  }
  func.func @transform_7(%arg0: i32) -> (i32, i32) {
    %c0_i32 = arith.constant 0 : i32
    %c0_i32_0 = arith.constant 0 : i32
    return %arg0, %c0_i32 : i32, i32
  }
}

</mosaic_0001>

<bundles_post_ra>
// kernel: tpu_custom_call.1
= control target key start
LH: loop header
LB: loop body
LE: loop exit
PB: predicated region body
PF: predicated region fallthrough
CT: control target
= control target key end

     0   :  { %s1328_s24 = smov 0   ;;  %s1581_s0 = inlined_call_operand.vmem [shape: f32[384,16], index: 0, kind: input, shape index: {}]   ;;  %s1582_s1 = inlined_call_operand.vmem [shape: bf16[16,128], index: 1, kind: input, shape index: {}]   ;;  %s1583_s2 = inlined_call_operand.vmem [shape: f32[1,128], index: 2, kind: input, shape index: {}]   ;;  %s1584_s3 = inlined_call_operand.vmem [shape: bf16[128,128], index: 3, kind: input, shape index: {}]   ;;  %s1585_s4 = inlined_call_operand.vmem [shape: f32[1,128], index: 4, kind: input, shape index: {}]   ;;  %s1586_s5 = inlined_call_operand.vmem [shape: bf16[128,8], index: 5, kind: input, shape index: {}]   ;;  %s1587_s6 = inlined_call_operand.vmem [shape: f32[1,8], index: 6, kind: input, shape index: {}]   ;;  %s1588_s7 = inlined_call_operand.vmem [shape: f32[384,8], index: 7, kind: output, shape index: {}]  }
   0x1 LB: > { %s1053_s25 = sadd.s32 4294967295, %s1286_s24   ;;  %p1057_p0 = scmp.ge.s32.totalorder %s1286_s24, 1  ;;  %s1286_s24 = sphi %s1328_s24, %s17_s24  }
   0x2   : > { %p238_p1 = scmp.lt.s32.totalorder %s1286_s24, 3 }
   0x4   : > { %p239_p2 = pnand %p1057_p0, %p238_p1 }
   0x5   : > { %s270_s28 = smul.u32 (!%p239_p2), 24, %s1053_s25 }
   0x6   : > { %242 = sbr.rel (%p239_p2) target bundleno = 672 (0x2a0), region = 48 }
   0x7   : > { %p271_p3 = scmp.lt.s32.totalorder (!%p239_p2), %s270_s28, 47 }
   0xb   : > { %v1263_v0 = vld [vmem:[%s1582_s1] sm:$0xff]   ;;  %v1264_v1 = vld [vmem:[%s1584_s3 + $0x38] sm:$0xff]   ;;  %s1590_s28 = smov (!%p271_p3, %s270_s28), 47  ;;  %vm334_vm0 = vcmask 130048   ;;  %v1265_v23 = vld [vmem:[%s1584_s3 + $0x30] sm:$0xff]   ;;  %vm972_vm1 = vcmask 64512  }
   0xc   : > { %1147 = vmatprep.subr.bf16.mxu0 %v1263_v0  ;;  %1253 = vmatprep.subr.bf16.mxu1 %v1263_v0  ;;  %s1058_s8 = sshll.u32 %s1590_s28, 3  ;;  %v1266_v29 = vld [vmem:[%s1584_s3 + $0x28] sm:$0xff]   ;;  %v1267_v35 = vld [vmem:[%s1584_s3 + $0x20] sm:$0xff]   ;;  %v1268_v38 = vld [vmem:[%s1584_s3 + $0x18] sm:$0xff]  }
   0xd   : > { %1148 = vmatpush3.bf16.msra.mxu0 %v1263_v0  ;;  %1254 = vmatpush3.bf16.msra.mxu1 %v1263_v0  ;;  %s1350_s11 = scalar_lea.vmem %s1581_s0, %s1058_s8  ;;  %v1269_v42 = vld [vmem:[%s1584_s3 + $0x10] sm:$0xff]   ;;  %v1270_v43 = vld [vmem:[%s1584_s3 + $0x8] sm:$0xff]   ;;  %v1271_v44 = vld [vmem:[%s1584_s3] sm:$0xff]   ;;  %s1504_s10 = scalar_lea.vmem %s1588_s7, %s1058_s8 }
   0xe   : > { %1173 = vmatprep.subr.bf16.mxu1 %v1264_v1  ;;  %v283_v2 = vld [vmem:[%s1350_s11] sm:$0xff]  ;;  %v284_v3 = vld [vmem:[%s1350_s11 + $0x8] sm:$0xff]  ;;  %v285_v4 = vld [vmem:[%s1350_s11 + $0x10] sm:$0xff] }
   0xf   : > { %v307_v5 = vpack.c.bf16 %v284_v3, %v283_v2  ;;  %v286_v6 = vld [vmem:[%s1350_s11 + $0x18] sm:$0xff]  ;;  %v287_v7 = vld [vmem:[%s1350_s11 + $0x20] sm:$0xff]  ;;  %v288_v8 = vld [vmem:[%s1350_s11 + $0x28] sm:$0xff] }
  0x10   : > { %v308_v9 = vpack.c.bf16 %v286_v6, %v285_v4  ;;  %v309_v10 = vpack.c.bf16 %v288_v8, %v287_v7  ;;  %v289_v11 = vld [vmem:[%s1350_s11 + $0x30] sm:$0xff]  ;;  %v290_v12 = vld [vmem:[%s1350_s11 + $0x38] sm:$0xff]  ;;  %v291_v13 = vld [vmem:[%s1350_s11 + $0x40] sm:$0xff] }
  0x11   : > { %1149 = vmatprep.mubr.msk.bf16.mxu0 %vm334_vm0, %v307_v5  ;;  %v292_v14 = vld [vmem:[%s1350_s11 + $0x48] sm:$0xff]  ;;  %v299_v15 = vld [vmem:[%s1350_s11 + $0x80] sm:$0xff]  ;;  %v301_v18 = vld [vmem:[%s1350_s11 + $0x90] sm:$0xff]  ;;  %v310_v24 = vpack.c.bf16 %v290_v12, %v289_v11 }
  0x12   : > { %1150 = vmatmul.mubr.msk.bf16.vlgmr.msra.gmra.mxu0 %vm334_vm0, %v308_v9  ;;  %v300_v16 = vld [vmem:[%s1350_s11 + $0x88] sm:$0xff]  ;;  %v302_v19 = vld [vmem:[%s1350_s11 + $0x98] sm:$0xff]  ;;  %v303_v20 = vld [vmem:[%s1350_s11 + $0xa0] sm:$0xff]  ;;  %v311_v28 = vpack.c.bf16 %v292_v14, %v291_v13 }
  0x13   : > { %1153 = vmatprep.mubr.msk.bf16.mxu0 %vm334_vm0, %v309_v10  ;;  %v315_v17 = vpack.c.bf16 %v300_v16, %v299_v15  ;;  %v316_v21 = vpack.c.bf16 %v302_v19, %v301_v18  ;;  %v304_v22 = vld [vmem:[%s1350_s11 + $0xa8] sm:$0xff]  ;;  %v305_v26 = vld [vmem:[%s1350_s11 + $0xb0] sm:$0xff]  ;;  %v306_v27 = vld [vmem:[%s1350_s11 + $0xb8] sm:$0xff] }
  0x14   : > { %v317_v25 = vpack.c.bf16 %v304_v22, %v303_v20  ;;  %v293_v30 = vld [vmem:[%s1350_s11 + $0x50] sm:$0xff]  ;;  %v294_v31 = vld [vmem:[%s1350_s11 + $0x58] sm:$0xff]  ;;  %v318_v32 = vpack.c.bf16 %v306_v27, %v305_v26  ;;  %v295_v33 = vld [vmem:[%s1350_s11 + $0x60] sm:$0xff] }
  0x15   : > { %1165 = vmatprep.mubr.msk.bf16.mxu1 %vm334_vm0, %v315_v17  ;;  %v296_v34 = vld [vmem:[%s1350_s11 + $0x68] sm:$0xff]  ;;  %v312_v36 = vpack.c.bf16 %v294_v31, %v293_v30  ;;  %v297_v39 = vld [vmem:[%s1350_s11 + $0x70] sm:$0xff]  ;;  %v298_v40 = vld [vmem:[%s1350_s11 + $0x78] sm:$0xff] }
  0x16   : > { %1166 = vmatmul.mubr.msk.bf16.vlgmr.msra.gmra.mxu1 %vm334_vm0, %v316_v21  ;;  %v313_v37 = vpack.c.bf16 %v296_v34, %v295_v33  ;;  %v314_v41 = vpack.c.bf16 %v298_v40, %v297_v39  ;;  %v1272_v45 = vld [vmem:[%s1586_s5 + $0x38] sm:$0xff]   ;;  %v1273_v46 = vld [vmem:[%s1586_s5 + $0x30] sm:$0xff]   ;;  %v1274_v47 = vld [vmem:[%s1586_s5 + $0x28] sm:$0xff]  }
  0x17   : > { %1169 = vmatprep.mubr.msk.bf16.mxu1 %vm334_vm0, %v317_v25  ;;  %1174 = vmatpush3.bf16.msra.mxu1 %v1264_v1  ;;  %v1275_v48 = vld [vmem:[%s1586_s5 + $0x20] sm:$0xff]   ;;  %v1276_v49 = vld [vmem:[%s1586_s5 + $0x18] sm:$0xff]  }
  0x18   : > { %1175 = vmatprep.subr.bf16.mxu1 %v1265_v23  ;;  %1213 = vmatprep.subr.bf16.mxu0 %v1272_v45  ;;  %v1427_v52 = vld [vmem:[%s1583_s2] ss:$0 sm:$0xff] }
  0x19   : > { %1214 = vmatpush3.bf16.msra.mxu0 %v1272_v45 }
  0x1a   : > { %1154 = vmatmul.mubr.msk.bf16.gmra.mxu0 %vm334_vm0, %v310_v24  ;;  %1215 = vmatprep.subr.bf16.mxu0 %v1273_v46 }
  0x1b   : > { %1157 = vmatprep.mubr.msk.bf16.mxu0 %vm334_vm0, %v311_v28  ;;  %1176 = vmatpush3.bf16.msra.mxu1 %v1265_v23 }
  0x1c   : > { %1177 = vmatprep.subr.bf16.mxu1 %v1266_v29 }
  0x1d   : > { %1216 = vmatpush3.bf16.msra.mxu0 %v1273_v46 }
  0x1e   : > { %1170 = vmatmul.mubr.msk.bf16.gmra.mxu1 %vm334_vm0, %v318_v32  ;;  %1217 = vmatprep.subr.bf16.mxu0 %v1274_v47 }
  0x1f   : > { %1178 = vmatpush3.bf16.msra.mxu1 %v1266_v29 }
  0x20   : > { %1179 = vmatprep.subr.bf16.mxu1 %v1267_v35 }
  0x21   : > { %1218 = vmatpush3.bf16.msra.mxu0 %v1274_v47 }
  0x22   : > { %1158 = vmatmul.mubr.msk.bf16.gmra.mxu0 %vm334_vm0, %v312_v36  ;;  %1219 = vmatprep.subr.bf16.mxu0 %v1275_v48 }
  0x23   : > { %1161 = vmatprep.mubr.msk.bf16.mxu0 %vm334_vm0, %v313_v37  ;;  %1180 = vmatpush3.bf16.msra.mxu1 %v1267_v35 }
  0x24   : > { %1181 = vmatprep.subr.bf16.mxu1 %v1268_v38 }
  0x25   : > { %1220 = vmatpush3.bf16.msra.mxu0 %v1275_v48 }
  0x26   : > { %1221 = vmatprep.subr.bf16.mxu0 %v1276_v49 }
  0x27   : > { %1182 = vmatpush3.bf16.msra.mxu1 %v1268_v38 }
  0x28   : > { %1183 = vmatprep.subr.bf16.mxu1 %v1269_v42 }
  0x29   : > { %1222 = vmatpush3.bf16.msra.mxu0 %v1276_v49 }
  0x2a   : > { %1162 = vmatmul.mubr.msk.bf16.gmra.mxu0 %vm334_vm0, %v314_v41 }
  0x2b   : > { %1184 = vmatpush3.bf16.msra.mxu1 %v1269_v42 }
  0x2c   : > { %1185 = vmatprep.subr.bf16.mxu1 %v1270_v43 }
  0x2f   : > { %1186 = vmatpush3.bf16.msra.mxu1 %v1270_v43 }
  0x30   : > { %1187 = vmatprep.subr.bf16.mxu1 %v1271_v44 }
  0x33   : > { %1188 = vmatpush3.bf16.msra.mxu1 %v1271_v44 }
  0xd2   : > { %v1151_v50 = vpop.f32.mrf.mxu0 }
  0xd3   : > { %v414_v57 = vadd.f32 %v1151_v50, %v1427_v52 }
  0xd4   : > { %v405_v51 = vpop.f32.mrf.mxu0 }
  0xd5   : > { %v406_v54 = vadd.f32 %v1427_v52, %v405_v51  ;;  %v502_v1 = vmax.f32 %v414_v57, 0.0 }
  0xd6   : > { %v1152_v53 = vpop.f32.mrf.mxu0  ;;  %v1431_v56 = vpop.f32.mrf.mxu1 }
  0xd7   : > { %v417_v55 = vadd.f32 %v1152_v53, %v1427_v52  ;;  %v500_v63 = vmax.f32 %v406_v54, 0.0 }
  0xd8   : > { %v408_v58 = vpop.f32.mrf.mxu0  ;;  %v469_v62 = vpop.f32.mrf.mxu1 }
  0xd9   : > { %v409_v59 = vadd.f32 %v1427_v52, %v408_v58  ;;  %v503_v60 = vmax.f32 %v417_v55, 0.0  ;;  %v470_v36 = vadd.f32 %v1427_v52, %v469_v62 }
  0xda   : > { %v1155_v61 = vpop.f32.mrf.mxu0  ;;  %v1168_v6 = vpop.f32.mrf.mxu1 }
  0xdb   : > { %v501_v0 = vmax.f32 %v409_v59, 0.0  ;;  %v525_v4 = vpack.c.bf16 %v503_v60, %v502_v1  ;;  %v430_v9 = vadd.f32 %v1155_v61, %v1427_v52  ;;  %v516_v45 = vmax.f32 %v470_v36, 0.0 }
  0xdc   : > { %v421_v2 = vpop.f32.mrf.mxu0  ;;  %v472_v14 = vpop.f32.mrf.mxu1  ;;  %v478_v59 = vadd.f32 %v1431_v56, %v1427_v52  ;;  %v481_v61 = vadd.f32 %v1168_v6, %v1427_v52  ;;  %v1277_v6 = vld [vmem:[%s1586_s5 + $0x10] sm:$0xff]  }
  0xdd   : > { %v524_v3 = vpack.c.bf16 %v501_v0, %v500_v63  ;;  %v422_v7 = vadd.f32 %v1427_v52, %v421_v2  ;;  %v506_v17 = vmax.f32 %v430_v9, 0.0  ;;  %v473_v37 = vadd.f32 %v1427_v52, %v472_v14  ;;  %1223 = vmatprep.subr.bf16.mxu0 %v1277_v6  ;;  %v1278_v9 = vld [vmem:[%s1586_s5 + $0x8] sm:$0xff]  }
  0xde   : > { %v1156_v5 = vpop.f32.mrf.mxu0  ;;  %v1171_v22 = vpop.f32.mrf.mxu1  ;;  %v518_v0 = vmax.f32 %v478_v59, 0.0  ;;  %v519_v1 = vmax.f32 %v481_v61, 0.0  ;;  %1224 = vmatpush3.bf16.msra.mxu0 %v1277_v6 }
  0xdf   : > { %v433_v8 = vadd.f32 %v1156_v5, %v1427_v52  ;;  %1189 = vmatprep.mubr.bf16.mxu1 %v524_v3  ;;  %v504_v15 = vmax.f32 %v422_v7, 0.0  ;;  %v517_v47 = vmax.f32 %v473_v37, 0.0  ;;  %1225 = vmatprep.subr.bf16.mxu0 %v1278_v9 }
  0xe0   : > { %v424_v10 = vpop.f32.mrf.mxu0  ;;  %1190 = vmatmul.mubr.bf16.vlgmr.msra.gmra.mxu1 %v525_v4  ;;  %v485_v30 = vpop.f32.mrf.mxu1  ;;  %v533_v3 = vpack.c.bf16 %v519_v1, %v518_v0  ;;  %v494_v4 = vadd.f32 %v1171_v22, %v1427_v52 }
  0xe1   : > { %v425_v11 = vadd.f32 %v1427_v52, %v424_v10  ;;  %v507_v12 = vmax.f32 %v433_v8, 0.0  ;;  %v532_v55 = vpack.c.bf16 %v517_v47, %v516_v45  ;;  %v486_v57 = vadd.f32 %v1427_v52, %v485_v30 }
  0xe2   : > { %v1159_v13 = vpop.f32.mrf.mxu0  ;;  %v1172_v40 = vpop.f32.mrf.mxu1  ;;  %v522_v7 = vmax.f32 %v494_v4, 0.0  ;;  %1226 = vmatpush3.bf16.msra.mxu0 %v1278_v9 }
  0xe3   : > { %v505_v16 = vmax.f32 %v425_v11, 0.0  ;;  %v527_v20 = vpack.c.bf16 %v507_v12, %v506_v17  ;;  %v446_v25 = vadd.f32 %v1159_v13, %v1427_v52  ;;  %v520_v62 = vmax.f32 %v486_v57, 0.0  ;;  %v1468_v12 = vld [vmem:[%s1585_s4] ss:$0 sm:$0xff] }
  0xe4   : > { %v437_v18 = vpop.f32.mrf.mxu0  ;;  %v488_v49 = vpop.f32.mrf.mxu1  ;;  %v497_v5 = vadd.f32 %v1172_v40, %v1427_v52 }
  0xe5   : > { %v526_v19 = vpack.c.bf16 %v505_v16, %v504_v15  ;;  %v438_v23 = vadd.f32 %v1427_v52, %v437_v18  ;;  %v510_v33 = vmax.f32 %v446_v25, 0.0  ;;  %v489_v58 = vadd.f32 %v1427_v52, %v488_v49 }
  0xe6   : > { %v1160_v21 = vpop.f32.mrf.mxu0  ;;  %v523_v56 = vmax.f32 %v497_v5, 0.0 }
  0xe7   : > { %v449_v24 = vadd.f32 %v1160_v21, %v1427_v52  ;;  %1193 = vmatprep.mubr.bf16.mxu1 %v526_v19  ;;  %v508_v31 = vmax.f32 %v438_v23, 0.0  ;;  %v521_v63 = vmax.f32 %v489_v58, 0.0 }
  0xe8   : > { %v440_v26 = vpop.f32.mrf.mxu0  ;;  %1194 = vmatmul.mubr.bf16.gmra.mxu1 %v527_v20  ;;  %v535_v8 = vpack.c.bf16 %v523_v56, %v522_v7 }
  0xe9   : > { %v441_v27 = vadd.f32 %v1427_v52, %v440_v26  ;;  %v511_v28 = vmax.f32 %v449_v24, 0.0  ;;  %v534_v2 = vpack.c.bf16 %v521_v63, %v520_v62 }
  0xea   : > { %v1163_v29 = vpop.f32.mrf.mxu0 }
  0xeb   : > { %v509_v32 = vmax.f32 %v441_v27, 0.0  ;;  %v529_v38 = vpack.c.bf16 %v511_v28, %v510_v33  ;;  %v462_v43 = vadd.f32 %v1163_v29, %v1427_v52 }
  0xec   : > { %v453_v34 = vpop.f32.mrf.mxu0 }
  0xed   : > { %v528_v35 = vpack.c.bf16 %v509_v32, %v508_v31  ;;  %v454_v41 = vadd.f32 %v1427_v52, %v453_v34  ;;  %v514_v53 = vmax.f32 %v462_v43, 0.0 }
  0xee   : > { %v1164_v39 = vpop.f32.mrf.mxu0 }
  0xef   : > { %v465_v42 = vadd.f32 %v1164_v39, %v1427_v52  ;;  %1197 = vmatprep.mubr.bf16.mxu1 %v528_v35  ;;  %v512_v50 = vmax.f32 %v454_v41, 0.0 }
  0xf0   : > { %v456_v44 = vpop.f32.mrf.mxu0  ;;  %1198 = vmatmul.mubr.bf16.gmra.mxu1 %v529_v38 }
  0xf1   : > { %v457_v46 = vadd.f32 %v1427_v52, %v456_v44  ;;  %v515_v48 = vmax.f32 %v465_v42, 0.0  ;;  %v1279_v52 = vld [vmem:[%s1586_s5] sm:$0xff]  }
  0xf2   : > { %1227 = vmatprep.subr.bf16.mxu0 %v1279_v52 }
  0xf3   : > { %v513_v51 = vmax.f32 %v457_v46, 0.0  ;;  %v531_v60 = vpack.c.bf16 %v515_v48, %v514_v53  ;;  %1228 = vmatpush3.bf16.msra.mxu0 %v1279_v52 }
  0xf5   : > { %v530_v54 = vpack.c.bf16 %v513_v51, %v512_v50 }
  0xf7   : > { %1201 = vmatprep.mubr.bf16.mxu1 %v530_v54 }
  0xf8   : > { %1202 = vmatmul.mubr.bf16.gmra.mxu1 %v531_v60 }
  0xf9   : > { %1205 = vmatprep.mubr.bf16.mxu1 %v532_v55 }
 0x100   : > { %1206 = vmatmul.mubr.bf16.gmra.mxu1 %v533_v3 }
 0x101   : > { %1209 = vmatprep.mubr.bf16.mxu1 %v534_v2 }
 0x108   : > { %1210 = vmatmul.mubr.bf16.gmra.mxu1 %v535_v8 }
 0x1a0   : > { %v1191_v10 = vpop.f32.mrf.mxu1 }
 0x1a1   : > { %v650_v16 = vadd.f32 %v1191_v10, %v1468_v12 }
 0x1a2   : > { %v641_v11 = vpop.f32.mrf.mxu1 }
 0x1a3   : > { %v642_v14 = vadd.f32 %v1468_v12, %v641_v11  ;;  %v738_v23 = vmax.f32 %v650_v16, 0.0 }
 0x1a4   : > { %v1192_v13 = vpop.f32.mrf.mxu1 }
 0x1a5   : > { %v653_v15 = vadd.f32 %v1192_v13, %v1468_v12  ;;  %v736_v21 = vmax.f32 %v642_v14, 0.0 }
 0x1a6   : > { %v644_v17 = vpop.f32.mrf.mxu1 }
 0x1a7   : > { %v645_v18 = vadd.f32 %v1468_v12, %v644_v17  ;;  %v739_v19 = vmax.f32 %v653_v15, 0.0 }
 0x1a8   : > { %v1195_v20 = vpop.f32.mrf.mxu1 }
 0x1a9   : > { %v737_v22 = vmax.f32 %v645_v18, 0.0  ;;  %v761_v26 = vpack.c.bf16 %v739_v19, %v738_v23  ;;  %v666_v30 = vadd.f32 %v1195_v20, %v1468_v12 }
 0x1aa   : > { %v657_v24 = vpop.f32.mrf.mxu1 }
 0x1ab   : > { %v760_v25 = vpack.c.bf16 %v737_v22, %v736_v21  ;;  %v658_v28 = vadd.f32 %v1468_v12, %v657_v24  ;;  %v742_v37 = vmax.f32 %v666_v30, 0.0 }
 0x1ac   : > { %v1196_v27 = vpop.f32.mrf.mxu1 }
 0x1ad   : > { %v669_v29 = vadd.f32 %v1196_v27, %v1468_v12  ;;  %1229 = vmatprep.mubr.bf16.mxu0 %v760_v25  ;;  %v740_v35 = vmax.f32 %v658_v28, 0.0 }
 0x1ae   : > { %v660_v31 = vpop.f32.mrf.mxu1  ;;  %1230 = vmatmul.mubr.bf16.vlgmr.msra.gmra.mxu0 %v761_v26 }
 0x1af   : > { %v661_v32 = vadd.f32 %v1468_v12, %v660_v31  ;;  %v743_v33 = vmax.f32 %v669_v29, 0.0 }
 0x1b0   : > { %v1199_v34 = vpop.f32.mrf.mxu1 }
 0x1b1   : > { %v741_v36 = vmax.f32 %v661_v32, 0.0  ;;  %v763_v40 = vpack.c.bf16 %v743_v33, %v742_v37  ;;  %v682_v44 = vadd.f32 %v1199_v34, %v1468_v12  ;;  %v1497_v32 = vld [vmem:[%s1587_s6] ss:$0 sm:$0xff] }
 0x1b2   : > { %v673_v38 = vpop.f32.mrf.mxu1 }
 0x1b3   : > { %v762_v39 = vpack.c.bf16 %v741_v36, %v740_v35  ;;  %v674_v42 = vadd.f32 %v1468_v12, %v673_v38  ;;  %v746_v51 = vmax.f32 %v682_v44, 0.0 }
 0x1b4   : > { %v1200_v41 = vpop.f32.mrf.mxu1 }
 0x1b5   : > { %v685_v43 = vadd.f32 %v1200_v41, %v1468_v12  ;;  %1233 = vmatprep.mubr.bf16.mxu0 %v762_v39  ;;  %v744_v49 = vmax.f32 %v674_v42, 0.0 }
 0x1b6   : > { %v676_v45 = vpop.f32.mrf.mxu1  ;;  %1234 = vmatmul.mubr.bf16.gmra.mxu0 %v763_v40 }
 0x1b7   : > { %v677_v46 = vadd.f32 %v1468_v12, %v676_v45  ;;  %v747_v47 = vmax.f32 %v685_v43, 0.0 }
 0x1b8   : > { %v1203_v48 = vpop.f32.mrf.mxu1 }
 0x1b9   : > { %v745_v50 = vmax.f32 %v677_v46, 0.0  ;;  %v765_v55 = vpack.c.bf16 %v747_v47, %v746_v51  ;;  %v698_v60 = vadd.f32 %v1203_v48, %v1468_v12 }
 0x1ba   : > { %v689_v53 = vpop.f32.mrf.mxu1 }
 0x1bb   : > { %v764_v54 = vpack.c.bf16 %v745_v50, %v744_v49  ;;  %v690_v58 = vadd.f32 %v1468_v12, %v689_v53  ;;  %v750_v3 = vmax.f32 %v698_v60, 0.0 }
 0x1bc   : > { %v1204_v57 = vpop.f32.mrf.mxu1 }
 0x1bd   : > { %v701_v59 = vadd.f32 %v1204_v57, %v1468_v12  ;;  %1237 = vmatprep.mubr.bf16.mxu0 %v764_v54  ;;  %v748_v1 = vmax.f32 %v690_v58, 0.0 }
 0x1be   : > { %v692_v61 = vpop.f32.mrf.mxu1  ;;  %1238 = vmatmul.mubr.bf16.gmra.mxu0 %v765_v55 }
 0x1bf   : > { %v693_v62 = vadd.f32 %v1468_v12, %v692_v61  ;;  %v751_v63 = vmax.f32 %v701_v59, 0.0 }
 0x1c0   : > { %v1207_v0 = vpop.f32.mrf.mxu1 }
 0x1c1   : > { %v749_v2 = vmax.f32 %v693_v62, 0.0  ;;  %v767_v7 = vpack.c.bf16 %v751_v63, %v750_v3  ;;  %v714_v9 = vadd.f32 %v1207_v0, %v1468_v12 }
 0x1c2   : > { %v705_v4 = vpop.f32.mrf.mxu1 }
 0x1c3   : > { %v766_v5 = vpack.c.bf16 %v749_v2, %v748_v1  ;;  %v706_v8 = vadd.f32 %v1468_v12, %v705_v4  ;;  %v754_v16 = vmax.f32 %v714_v9, 0.0 }
 0x1c4   : > { %v1208_v56 = vpop.f32.mrf.mxu1 }
 0x1c5   : > { %v717_v6 = vadd.f32 %v1208_v56, %v1468_v12  ;;  %1241 = vmatprep.mubr.bf16.mxu0 %v766_v5  ;;  %v752_v14 = vmax.f32 %v706_v8, 0.0 }
 0x1c6   : > { %v708_v52 = vpop.f32.mrf.mxu1  ;;  %1242 = vmatmul.mubr.bf16.gmra.mxu0 %v767_v7 }
 0x1c7   : > { %v709_v10 = vadd.f32 %v1468_v12, %v708_v52  ;;  %v755_v11 = vmax.f32 %v717_v6, 0.0 }
 0x1c8   : > { %v1211_v13 = vpop.f32.mrf.mxu1 }
 0x1c9   : > { %v753_v15 = vmax.f32 %v709_v10, 0.0  ;;  %v769_v19 = vpack.c.bf16 %v755_v11, %v754_v16  ;;  %v730_v23 = vadd.f32 %v1211_v13, %v1468_v12 }
 0x1ca   : > { %v721_v17 = vpop.f32.mrf.mxu1 }
 0x1cb   : > { %v768_v18 = vpack.c.bf16 %v753_v15, %v752_v14  ;;  %v722_v21 = vadd.f32 %v1468_v12, %v721_v17  ;;  %v758_v29 = vmax.f32 %v730_v23, 0.0 }
 0x1cc   : > { %v1212_v20 = vpop.f32.mrf.mxu1 }
 0x1cd   : > { %v733_v22 = vadd.f32 %v1212_v20, %v1468_v12  ;;  %1245 = vmatprep.mubr.bf16.mxu0 %v768_v18  ;;  %v756_v27 = vmax.f32 %v722_v21, 0.0 }
 0x1ce   : > { %v724_v24 = vpop.f32.mrf.mxu1  ;;  %1246 = vmatmul.mubr.bf16.gmra.mxu0 %v769_v19 }
 0x1cf   : > { %v725_v25 = vadd.f32 %v1468_v12, %v724_v24  ;;  %v759_v26 = vmax.f32 %v733_v22, 0.0 }
 0x1d1   : > { %v757_v28 = vmax.f32 %v725_v25, 0.0  ;;  %v771_v31 = vpack.c.bf16 %v759_v26, %v758_v29 }
 0x1d3   : > { %v770_v30 = vpack.c.bf16 %v757_v28, %v756_v27 }
 0x1d5   : > { %1249 = vmatprep.mubr.bf16.mxu0 %v770_v30 }
 0x1d6   : > { %1250 = vmatmul.mubr.bf16.gmra.mxu0 %v771_v31 }
 0x26e   : > { %v1231_v12 = vpop.f32.mrf.mxu0 }
 0x26f   : > { %v886_v33 = vadd.f32 %v1231_v12, %v1497_v32 }
 0x270   : > { %v877_v34 = vpop.f32.mrf.mxu0 }
 0x271   : > { %975 = vst.msk [vmem:[%s1504_s10 + $0x10] sm:$0xff] %vm972_vm1, %v886_v33  ;;  %v878_v35 = vadd.f32 %v1497_v32, %v877_v34 }
 0x272   : > { %v1232_v36 = vpop.f32.mrf.mxu0 }
 0x273   : > { %973 = vst.msk [vmem:[%s1504_s10] sm:$0xff] %vm972_vm1, %v878_v35  ;;  %v889_v37 = vadd.f32 %v1232_v36, %v1497_v32 }
 0x274   : > { %v880_v38 = vpop.f32.mrf.mxu0 }
 0x275   : > { %976 = vst.msk [vmem:[%s1504_s10 + $0x18] sm:$0xff] %vm972_vm1, %v889_v37  ;;  %v881_v39 = vadd.f32 %v1497_v32, %v880_v38 }
 0x276   : > { %v1235_v40 = vpop.f32.mrf.mxu0 }
 0x277   : > { %974 = vst.msk [vmem:[%s1504_s10 + $0x8] sm:$0xff] %vm972_vm1, %v881_v39  ;;  %v902_v41 = vadd.f32 %v1235_v40, %v1497_v32 }
 0x278   : > { %v893_v42 = vpop.f32.mrf.mxu0 }
 0x279   : > { %979 = vst.msk [vmem:[%s1504_s10 + $0x30] sm:$0xff] %vm972_vm1, %v902_v41  ;;  %v894_v43 = vadd.f32 %v1497_v32, %v893_v42 }
 0x27a   : > { %v1236_v44 = vpop.f32.mrf.mxu0 }
 0x27b   : > { %977 = vst.msk [vmem:[%s1504_s10 + $0x20] sm:$0xff] %vm972_vm1, %v894_v43  ;;  %v905_v45 = vadd.f32 %v1236_v44, %v1497_v32 }
 0x27c   : > { %v896_v46 = vpop.f32.mrf.mxu0 }
 0x27d   : > { %980 = vst.msk [vmem:[%s1504_s10 + $0x38] sm:$0xff] %vm972_vm1, %v905_v45  ;;  %v897_v47 = vadd.f32 %v1497_v32, %v896_v46 }
 0x27e   : > { %v1239_v48 = vpop.f32.mrf.mxu0 }
 0x27f   : > { %978 = vst.msk [vmem:[%s1504_s10 + $0x28] sm:$0xff] %vm972_vm1, %v897_v47  ;;  %v918_v49 = vadd.f32 %v1239_v48, %v1497_v32 }
 0x280   : > { %v909_v50 = vpop.f32.mrf.mxu0 }
 0x281   : > { %983 = vst.msk [vmem:[%s1504_s10 + $0x50] sm:$0xff] %vm972_vm1, %v918_v49  ;;  %v910_v51 = vadd.f32 %v1497_v32, %v909_v50 }
 0x282   : > { %v1240_v53 = vpop.f32.mrf.mxu0 }
 0x283   : > { %981 = vst.msk [vmem:[%s1504_s10 + $0x40] sm:$0xff] %vm972_vm1, %v910_v51  ;;  %v921_v54 = vadd.f32 %v1240_v53, %v1497_v32 }
 0x284   : > { %v912_v55 = vpop.f32.mrf.mxu0 }
 0x285   : > { %984 = vst.msk [vmem:[%s1504_s10 + $0x58] sm:$0xff] %vm972_vm1, %v921_v54  ;;  %v913_v57 = vadd.f32 %v1497_v32, %v912_v55 }
 0x286   : > { %v1243_v58 = vpop.f32.mrf.mxu0 }
 0x287   : > { %982 = vst.msk [vmem:[%s1504_s10 + $0x48] sm:$0xff] %vm972_vm1, %v913_v57  ;;  %v934_v59 = vadd.f32 %v1243_v58, %v1497_v32 }
 0x288   : > { %v925_v60 = vpop.f32.mrf.mxu0 }
 0x289   : > { %987 = vst.msk [vmem:[%s1504_s10 + $0x70] sm:$0xff] %vm972_vm1, %v934_v59  ;;  %v926_v61 = vadd.f32 %v1497_v32, %v925_v60 }
 0x28a   : > { %v1244_v62 = vpop.f32.mrf.mxu0 }
 0x28b   : > { %985 = vst.msk [vmem:[%s1504_s10 + $0x60] sm:$0xff] %vm972_vm1, %v926_v61  ;;  %v937_v63 = vadd.f32 %v1244_v62, %v1497_v32 }
 0x28c   : > { %v928_v0 = vpop.f32.mrf.mxu0 }
 0x28d   : > { %988 = vst.msk [vmem:[%s1504_s10 + $0x78] sm:$0xff] %vm972_vm1, %v937_v63  ;;  %v929_v1 = vadd.f32 %v1497_v32, %v928_v0 }
 0x28e   : > { %v1247_v2 = vpop.f32.mrf.mxu0 }
 0x28f   : > { %986 = vst.msk [vmem:[%s1504_s10 + $0x68] sm:$0xff] %vm972_vm1, %v929_v1  ;;  %v950_v3 = vadd.f32 %v1247_v2, %v1497_v32 }
 0x290   : > { %v941_v4 = vpop.f32.mrf.mxu0 }
 0x291   : > { %991 = vst.msk [vmem:[%s1504_s10 + $0x90] sm:$0xff] %vm972_vm1, %v950_v3  ;;  %v942_v5 = vadd.f32 %v1497_v32, %v941_v4 }
 0x292   : > { %v1248_v7 = vpop.f32.mrf.mxu0 }
 0x293   : > { %989 = vst.msk [vmem:[%s1504_s10 + $0x80] sm:$0xff] %vm972_vm1, %v942_v5  ;;  %v953_v56 = vadd.f32 %v1248_v7, %v1497_v32 }
 0x294   : > { %v944_v8 = vpop.f32.mrf.mxu0 }
 0x295   : > { %992 = vst.msk [vmem:[%s1504_s10 + $0x98] sm:$0xff] %vm972_vm1, %v953_v56  ;;  %v945_v6 = vadd.f32 %v1497_v32, %v944_v8 }
 0x296   : > { %v1251_v9 = vpop.f32.mrf.mxu0 }
 0x297   : > { %990 = vst.msk [vmem:[%s1504_s10 + $0x88] sm:$0xff] %vm972_vm1, %v945_v6  ;;  %v966_v52 = vadd.f32 %v1251_v9, %v1497_v32 }
 0x298   : > { %v957_v10 = vpop.f32.mrf.mxu0 }
 0x299   : > { %995 = vst.msk [vmem:[%s1504_s10 + $0xb0] sm:$0xff] %vm972_vm1, %v966_v52  ;;  %v958_v11 = vadd.f32 %v1497_v32, %v957_v10 }
 0x29a   : > { %v1252_v13 = vpop.f32.mrf.mxu0 }
 0x29b   : > { %993 = vst.msk [vmem:[%s1504_s10 + $0xa0] sm:$0xff] %vm972_vm1, %v958_v11  ;;  %v969_v14 = vadd.f32 %v1252_v13, %v1497_v32 }
 0x29c   : > { %v960_v15 = vpop.f32.mrf.mxu0 }
 0x29d   : > { %996 = vst.msk [vmem:[%s1504_s10 + $0xb8] sm:$0xff] %vm972_vm1, %v969_v14  ;;  %v961_v16 = vadd.f32 %v1497_v32, %v960_v15 }
 0x29f   : > { %994 = vst.msk [vmem:[%s1504_s10 + $0xa8] sm:$0xff] %vm972_vm1, %v961_v16 }
 0x2a0 PF: > { %s17_s24 = sadd.s32 1, %s1286_s24  }
 0x2a1   : > { %p14_p4 = scmp.ge.s32.totalorder %s17_s24, 4  }
 0x2a3   :  { %16 = sbr.rel (!%p14_p4) target bundleno = 1 (0x1), region = 78 }

</bundles_post_ra>
